<compile_context>
chip_gen: v7x
topology: tpu7x:2x2x1
jax: 0.10.0
libtpu: 0.0.40
codegen_flags: <defaults>
</compile_context>

<pallas_src>
import functools
import math

import jax
import jax.numpy as jnp
from jax.experimental import pallas as pl
from jax.experimental.pallas import tpu as pltpu

_LANE = 128


def _permute_kernel(x_ref, o_ref, *, perm):
    # Whole permuted tile produced in-kernel.  If perm[2] == 2 this is a
    # sublane/leading-only shuffle (no cross-lane transpose is emitted).
    o_ref[...] = jnp.transpose(x_ref[...], perm)


def _dedup(seq):
    out = []
    for s in seq:
        if s not in out:
            out.append(s)
    return out


def _cdiv(a, b):
    return -(-a // b)


def _lcm(a, b):
    return a * b // math.gcd(a, b)


def _vmem_capacity_bytes():
    """Per-core VMEM capacity; conservative 64 MiB (v7x) fallback."""
    try:
        info = pltpu.get_tpu_info()
        cap = int(getattr(info, "vmem_capacity_bytes", 0))
        if cap > 0:
            return cap
    except Exception:
        pass
    return 64 * 1024 * 1024


def _min_tile(dim, g):
    """Smallest legal tile for an axis with layout granularity g."""
    return dim if dim <= g else g


def _fit_tile(dim, g, cap):
    """Tile length for one axis, bounded by `cap`.

    Prefers (a) the full axis when it fits, then (b) the largest divisor of
    `dim` that is a multiple of `g` and <= cap (no masked edge blocks), else
    (c) a dense multiple-of-`g` tile — the grid then uses cdiv and Pallas
    masks the edge blocks.  Never silently inflates to the full axis on large
    non-divisible dims (that is what blew past v7x's VMEM before).
    """
    if dim <= cap:
        return dim
    g = max(g, 1)
    cap = max(cap, g)
    if dim % g == 0:
        n0 = _cdiv(dim, cap)
        for n in range(n0, min(dim, n0 * 64) + 1):
            if dim % n == 0:
                t = dim // n
                if t % g == 0 and t * 2 >= cap:
                    return t
    # No decent clean divisor under the cap -> dense masked tile.
    return min(dim, max(g, (cap // g) * g))


def permute3(x, dim0, dim1, dim2, *, tile_budget_bytes=None):
    """Pallas equivalent of torch.Tensor.permute(dim0, dim1, dim2) for 3-D x."""
    perm = (dim0, dim1, dim2)
    assert x.ndim == 3 and sorted(perm) == [0, 1, 2], "expects a rank-3 permutation"
    if perm == (0, 1, 2):
        return x  # identity permute is a view in torch; nothing to move

    shape = x.shape
    itemsize = jnp.dtype(x.dtype).itemsize
    sub = max(8, 32 // itemsize)  # sublane granularity: 8 f32 / 16 bf16 / 32 int8

    vmem_cap = _vmem_capacity_bytes()
    if tile_budget_bytes is None:
        # Generation-aware per-block budget: ~4 MiB on v7x (64 MiB VMEM/TC),
        # ~8 MiB on v5e/v6e (128 MiB VMEM); never below 2 MiB.
        tile_budget_bytes = min(8 << 20, max(2 << 20, vmem_cap // 16))

    # Per ORIGINAL axis: layout granularity its tile must respect — lcm of its
    # role in the input block (axis 1 sublane, axis 2 lane) and in the
    # permuted output block (perm[1] sublane, perm[2] lane).  A tile equal to
    # the full axis is always legal too.
    g = [1, 1, 1]
    g[1] = _lcm(g[1], sub)
    g[2] = _lcm(g[2], _LANE)
    g[perm[1]] = _lcm(g[perm[1]], sub)
    g[perm[2]] = _lcm(g[perm[2]], _LANE)

    mins = [_min_tile(shape[a], g[a]) for a in range(3)]

    # While other axes are sized, reserve room so the ORIGINAL axis 2 (input's
    # HBM-contiguous axis) can still get >= 512 elements (>= 2 KiB f32 rows):
    # long read bursts on the strided side of the permute.
    reserve = list(mins)
    reserve[2] = max(mins[2], _fit_tile(shape[2], g[2], min(shape[2], 512)))

    # Output-store density saturates well before 2048 lanes: cap the output
    # lane axis so it cannot soak the whole budget away from axis 2.
    caps = [shape[a] for a in range(3)]
    caps[perm[2]] = min(caps[perm[2]], 2048)

    # Greedy tile sizing inside the budget: output lane axis first, then the
    # input lane axis (axis 2), then sublane axes, then free leading axes.
    order = _dedup((perm[2], 2, perm[1], 1, perm[0], 0))
    budget = max(1, tile_budget_bytes // itemsize)
    tiles = [0, 0, 0]
    for pos, a in enumerate(order):
        res = 1
        for b in order[pos + 1:]:
            res *= reserve[b]
        cap = max(mins[a], min(caps[a], budget // max(1, res)))
        tiles[a] = _fit_tile(shape[a], g[a], cap)
        budget = max(1, budget // tiles[a])

    def _steps():
        n = 1
        for a in range(3):
            n *= _cdiv(shape[a], tiles[a])
        return n

    # Pipelining / megacore: aim for >= 8 grid steps (>= 4 per TensorCore on
    # v7x) by splitting leading / sublane axes when the array fits in only a
    # handful of blocks.  The output-lane axis is never split here.
    target_steps = 8
    for a in _dedup((perm[0], 0, perm[1], 1)):
        steps = _steps()
        if steps >= target_steps:
            break
        if g[a] < _LANE and shape[a] >= 2 * g[a]:
            want = _cdiv(target_steps, steps)
            t = _fit_tile(shape[a], g[a], max(g[a], shape[a] // want))
            if t < tiles[a]:
                tiles[a] = t

    in_block = tuple(tiles)
    out_block = tuple(tiles[p] for p in perm)
    out_shape = tuple(shape[p] for p in perm)
    block_bytes = tiles[0] * tiles[1] * tiles[2] * itemsize

    # Grid ordering: every grid point writes a disjoint output block, so the
    # ordering is free — put the ORIGINAL axis 2 innermost so successive input
    # DMAs hit adjacent HBM regions (helps the strided read side).
    gaxes = [a for a in perm if a != 2] + [2]
    grid = tuple(_cdiv(shape[a], tiles[a]) for a in gaxes)
    gpos = {a: k for k, a in enumerate(gaxes)}  # original axis -> grid dim

    def in_index_map(*gi):
        return tuple(gi[gpos[a]] for a in range(3))

    def out_index_map(*gi):
        return tuple(gi[gpos[perm[k]]] for k in range(3))

    def build(num_in_buffers):
        if num_in_buffers > 2 and hasattr(pl, "Buffered"):
            in_spec = pl.BlockSpec(in_block, in_index_map,
                                   pipeline_mode=pl.Buffered(num_in_buffers))
        else:
            num_in_buffers = 2
            in_spec = pl.BlockSpec(in_block, in_index_map)
        # Scoped-VMEM limit sized to the live buffers (+50% headroom), clamped
        # inside the chip's physical VMEM and never below the 32 MiB default.
        need = (num_in_buffers + 2) * block_bytes
        vmem_limit = int(min(max(vmem_cap - (8 << 20), 32 << 20),
                             max(32 << 20, need + need // 2 + (2 << 20))))
        return pl.pallas_call(
            functools.partial(_permute_kernel, perm=perm),
            out_shape=jax.ShapeDtypeStruct(out_shape, x.dtype),
            grid_spec=pl.GridSpec(
                grid=grid,
                in_specs=[in_spec],
                out_specs=pl.BlockSpec(out_block, out_index_map),
            ),
            compiler_params=pltpu.CompilerParams(
                dimension_semantics=("parallel", "parallel", "parallel"),
                vmem_limit_bytes=vmem_limit,
            ),
            cost_estimate=pl.CostEstimate(
                flops=0, transcendentals=0,
                bytes_accessed=2 * x.size * itemsize),
        )(x)

    total_steps = grid[0] * grid[1] * grid[2]
    # Triple-buffer the input only where there is ample VMEM (v5e/v6e class,
    # 128 MiB) and enough grid steps for the extra buffer to hide DMA latency.
    if vmem_cap >= (100 << 20) and total_steps >= 4 and 10 * block_bytes < vmem_cap:
        try:
            return build(3)
        except Exception:
            pass  # pipeline_mode unsupported / VMEM-tight -> standard pipeline
    return build(2)


if __name__ == "__main__":
    key = jax.random.PRNGKey(0)
    B, S, H = 2, 16, 32
    x = jax.random.normal(key, (B, S, H), dtype=jnp.float32)

    # Module under test: Permute(0, 2, 1) — swap the last two axes.
    out = jax.block_until_ready(permute3(x, 0, 2, 1))
    ref = jnp.transpose(x, (0, 2, 1))
    assert out.shape == ref.shape, (out.shape, ref.shape)
    assert jnp.array_equal(out, ref), "mismatch vs jnp.transpose (0,2,1)"

    # Permutation that moves the lane axis to the front.
    out2 = jax.block_until_ready(permute3(x, 2, 0, 1))
    assert jnp.array_equal(out2, jnp.transpose(x, (2, 0, 1))), "mismatch (2,0,1)"

    # Sublane-only permutation (lane axis stays put -> no cross-lane work).
    out3 = jax.block_until_ready(permute3(x, 1, 0, 2))
    assert jnp.array_equal(out3, jnp.transpose(x, (1, 0, 2))), "mismatch (1,0,2)"

    # Larger, tile-aligned shape exercising the multi-step pipelined path.
    y = jax.random.normal(jax.random.PRNGKey(1), (4, 256, 256), dtype=jnp.float32)
    out4 = jax.block_until_ready(permute3(y, 0, 2, 1))
    assert jnp.array_equal(out4, jnp.transpose(y, (0, 2, 1))), "mismatch tiled (0,2,1)"

    # Non-divisible axis with a tiny forced budget: exercises the cdiv grid +
    # masked edge blocks path (the v7x VMEM-robustness fix).
    z = jax.random.normal(jax.random.PRNGKey(2), (2, 136, 256), dtype=jnp.float32)
    out5 = jax.block_until_ready(permute3(z, 0, 2, 1, tile_budget_bytes=64 << 10))
    assert jnp.array_equal(out5, jnp.transpose(z, (0, 2, 1))), "mismatch masked-edge"

    print("KERNEL_OK")
</pallas_src>

<mosaic_0001>
module attributes {stable_mosaic.version = 11 : i64} {
  func.func @_permute_kernel(%arg0: i32, %arg1: i32, %arg2: i32, %arg3: memref<1x16x32xf32, #tpu.memory_space<vmem>>, %arg4: memref<1x32x16xf32, #tpu.memory_space<vmem>>) attributes {dimension_semantics = [#tpu.dimension_semantics<parallel>, #tpu.dimension_semantics<parallel>, #tpu.dimension_semantics<parallel>], iteration_bounds = array<i64: 2, 1, 1>, scalar_prefetch = 0 : i64, scratch_operands = 0 : i64, tpu.core_type = #tpu.core_type<tc>, window_params = [{transform_indices = @transform_0, window_bounds = array<i64: 1, 16, 32>}, {transform_indices = @transform_1, window_bounds = array<i64: 1, 32, 16>}]} {
    %c0 = arith.constant 0 : index
    %c0_0 = arith.constant 0 : index
    %c0_1 = arith.constant 0 : index
    %0 = vector.load %arg3[%c0, %c0_0, %c0_1] : memref<1x16x32xf32, #tpu.memory_space<vmem>>, vector<1x16x32xf32>
    %1 = tpu.transpose %0, [0, 2, 1] : vector<1x16x32xf32> -> vector<1x32x16xf32>
    %c0_2 = arith.constant 0 : index
    %c0_3 = arith.constant 0 : index
    %c0_4 = arith.constant 0 : index
    %2 = vector.load %arg4[%c0_2, %c0_3, %c0_4] : memref<1x32x16xf32, #tpu.memory_space<vmem>>, vector<1x32x16xf32>
    tpu.vector_store %arg4[%c0_2, %c0_3, %c0_4], %1 {strides = array<i32>} : memref<1x32x16xf32, #tpu.memory_space<vmem>>, vector<1x32x16xf32>,
    return
  }
  func.func @transform_0(%arg0: i32, %arg1: i32, %arg2: i32) -> (i32, i32, i32) {
    %c0_i32 = arith.constant 0 : i32
    return %arg0, %arg1, %arg2 : i32, i32, i32
  }
  func.func @transform_1(%arg0: i32, %arg1: i32, %arg2: i32) -> (i32, i32, i32) {
    %c0_i32 = arith.constant 0 : i32
    return %arg0, %arg2, %arg1 : i32, i32, i32
  }
}

</mosaic_0001>

<bundles_post_ra>
// kernel: tpu_custom_call.1
= control target key start
LH: loop header
LB: loop body
LE: loop exit
PB: predicated region body
PF: predicated region fallthrough
CT: control target
= control target key end

     0   :  { %6 = vsyncpa [#allocation3], 0  ;;  %s623_s0 = inlined_call_operand.hbm [shape: f32[2,16,32], index: 0, kind: input, shape index: {}]   ;;  %s624_s1 = inlined_call_operand.vmem [shape: f32[2,32,16], index: 1, kind: output, shape index: {}]  }
   0x1   :  { %8 = vsyncpa [#allocation3 + $0x1], 0  ;;  %s499_s6 = smov 0   ;;  %s501_s7 = smov 0  }
   0x2   :  { %s503_s8 = smov 0   ;;  %s505_s9 = smov 0  }
   0x3   :  { %s507_s10 = smov 0   ;;  %s509_s11 = smov 0  }
   0x4 LB: > { %s331_s12 = sadd.s32 4294967295, %s484_s11   ;;  %s33_s13 = sadd.s32 1, %s480_s10  ;;  %s484_s11 = sphi %s509_s11, %s14_s11   ;;  %s480_s10 = sphi %s507_s10, %s632_s10   ;;  %s476_s9 = sphi %s505_s9, %s631_s9   ;;  %s472_s8 = sphi %s503_s8, %s630_s8   ;;  %s468_s7 = sphi %s501_s7, %s629_s7   ;;  %s464_s6 = sphi %s499_s6, %s628_s6  }
   0x5   : > { %p35_p0 = scmp.ge.s32.totalorder %s33_s13, 2  ;;  %s44_s14 = sadd.s32 1, %s472_s8 }
   0x6   : > { %p51_p1 = scmp.ne.s32.totalorder %s472_s8, %s468_s7  ;;  %p52_p2 = scmp.eq.s32.totalorder %s484_s11, 0 }
   0x7   : > { %s634_s13 = smov (%p35_p0, %s33_s13), 0  ;;  %p57_p4 = scmp.ne.s32.totalorder %s468_s7, %s464_s6 }
   0x8   : > { %p535_p3 = por %p52_p2, %p51_p1  ;;  %s37_s16 = ssub.s32 %s480_s10, %s634_s13 }
   0x9   : > { %p58_p5 = scmp.eq.s32.totalorder %s331_s12, 0  ;;  %p42_p6 = scmp.eq.s32.totalorder %s37_s16, 0 }
   0xa   : > { %p352_p8 = scmp.lt.s32.totalorder %s484_s11, 2  ;;  %s111_s19 = sand.u32 1, %s472_s8  }
   0xb   : > { %p542_p7 = por %p58_p5, %p57_p4  ;;  %s344_s20 = sshll.u32 %s480_s10, 8 }
   0xc   : > { %s548_s18 = scalar_select %p42_p6, %s472_s8, %s44_s14  }
   0xd   : > { %s335_s21 = sshll.u32 %s111_s19, 4  ;;  %s555_s24 = scalar_lea.hbm %s623_s0, %s344_s20 }
   0xe   : > { %s115_s25 = scalar_lea.vmem [#allocation2], %s335_s21  ;;  %p559_p9 = pnand %p352_p8, %p535_p3 }
   0xf   : > { %s125_s26 = sshll.u32 %s115_s25, 4  ;;  %s565_s28 = scalar_lea.sflag [#allocation3], %s111_s19  ;;  %s563_s26 = int_to_ptr.vmem [resolvable:$true] %s125_s26 }
  0x10   : > { %s404_s29 = scalar_lea.hbm %s555_s24, 256  ;;  %p406_p11 = pneg %p559_p9 }
  0x11   : > { %p405_p10 = scmp.ne.s32.totalorder %s555_s24, %s404_s29  ;;  %s409_s3 = scalar_lea.hbm %s623_s0, 512 }
  0x12   : > { %p410_p0 = scmp.lt.u32.totalorder %s555_s24, %s623_s0  ;;  %p411_p1 = scmp.lt.u32.totalorder %s409_s3, %s404_s29 }
  0x13   : > { %p407_p12 = pnand %p406_p11, %p405_p10  ;;  %p413_p3 = scmp.lt.u32.totalorder %s404_s29, %s555_s24 }
  0x14   : > { %p412_p2 = por %p411_p1, %p410_p0 }
  0x15   : > { %p408_p13 = pneg %p407_p12 }
  0x16   : > { %p414_p4 = por %p413_p3, %p412_p2 }
  0x18   : > { %p415_p5 = pnand %p414_p4, %p408_p13 }
  0x1a   : > { %418 = shalt.err (!%p415_p5)
}
  0x1b   : > { %s419_s6 = scalar_lea.vmem %s563_s26, 256  ;;  %s486_s12 = smov [#allocation2]  }
  0x1c   : > { %p420_p6 = scmp.ne.s32.totalorder %s563_s26, %s419_s6  ;;  %s424_s14 = sshll.u32 %s486_s12, 4  ;;  %s425_s14 = int_to_ptr.vmem [resolvable:$false] %s424_s14 }
  0x1d   : > { %s426_s15 = scalar_lea.vmem %s425_s14, 512  ;;  %p427_p12 = scmp.lt.s32.totalorder %s563_s26, %s425_s14 }
  0x1e   : > { %p422_p8 = pnand %p420_p6, %p406_p11  ;;  %p428_p0 = scmp.lt.s32.totalorder %s426_s15, %s419_s6 }
  0x20   : > { %p423_p10 = pneg %p422_p8  ;;  %p429_p1 = por %p428_p0, %p427_p12 }
  0x22   : > { %p430_p2 = pnand %p429_p1, %p423_p10 }
  0x24   : > { %433 = shalt.err (!%p430_p2)
}
  0x25   : > { %s487_s16 = smov 128   ;;  %s488_s19 = smov 8  }
  0x26   : > { %351 = dma.hbm_to_vmem [thread:$0]  (!%p559_p9), %s555_s24, 256, %s563_s26, %s565_s28, %s487_s16, %s487_s16, %s488_s19  }
  0x27   : > { %p338_p11 = scmp.ge.s32.totalorder %s484_s11, 1  ;;  %p133_p13 = scmp.lt.s32.totalorder %s484_s11, 3 }
  0x29   : > { %p134_p3 = pnand %p338_p11, %p133_p13 }
  0x2a   : > { %s139_s20 = sand.u32 (!%p134_p3), 1, %s468_s7  }
  0x2b   : > { %137 = sbr.rel (%p134_p3) target bundleno = 194 (0xc2), region = 24  ;;  %s339_s21 = sshll.u32 (!%p134_p3), %s139_s20, 4 }
  0x2c   : > { %s140_s22 = scalar_lea.sflag (!%p134_p3), [#allocation3], %s139_s20  ;;  %s143_s23 = scalar_lea.vmem (!%p134_p3), [#allocation2], %s339_s21 }
  0x32   : > { %459 = dma.done.wait (%p542_p7), %s140_s22, 256  }
  0x33   : > { %461 = vsyncadd (%p542_p7), %s140_s22, 4294967040  ;;  %v183_v0 = vld [vmem:[%s143_s23] sm:$0xff]  ;;  %v184_v1 = vld [vmem:[%s143_s23 + $0x8] sm:$0xff]  ;;  %p171_p9 = scmp.lt.s32.totalorder %s476_s9, 1  ;;  %vm217_vm0 = vcmask 130048  }
  0x34   : > { %185 = vxpose.xlu0.b32.start [1/2] (short) (narrow) %v183_v0, 32 }
  0x35   : > { %s636_s9 = smov (!%p171_p9, %s476_s9), 1 }
  0x36   : > { %s345_s24 = sshll.u32 %s636_s9, 5 }
  0x37   : > { %s181_s27 = scalar_lea.vmem %s624_s1, %s345_s24 }
  0x38   : > { %186 = vxpose.xlu0.b32.end [2/2] (short) (narrow) %v184_v1, 32 }
  0xb4   : > { %v201_v2 = vpop.trf.xlu0 }
  0xb5   : > { %218 = vst.msk [vmem:[%s181_s27] sm:$0xff] %vm217_vm0, %v201_v2 }
  0xb8   : > { %v202_v3 = vpop.trf.xlu0 }
  0xb9   : > { %219 = vst.msk [vmem:[%s181_s27 + $0x8] sm:$0xff] %vm217_vm0, %v202_v3 }
  0xbc   : > { %v203_v4 = vpop.trf.xlu0 }
  0xbd   : > { %220 = vst.msk [vmem:[%s181_s27 + $0x10] sm:$0xff] %vm217_vm0, %v203_v4 }
  0xc0   : > { %v204_v5 = vpop.trf.xlu0 }
  0xc1   : > { %221 = vst.msk [vmem:[%s181_s27 + $0x18] sm:$0xff] %vm217_vm0, %v204_v5 }
  0xc2 PF: > { %s14_s11 = sadd.s32 1, %s484_s11   ;;  %s628_s6 = smov %s468_s7 }
  0xc3   : > { %p11_p7 = scmp.ge.s32.totalorder %s14_s11, 4   ;;  %s629_s7 = smov %s472_s8 }
  0xc4   : > { %s630_s8 = smov %s548_s18  ;;  %s631_s9 = smov %s480_s10 }
  0xc5   : > { %s632_s10 = smov %s634_s13  ;;  %13 = sbr.rel (!%p11_p7) target bundleno = 4 (0x4), region = 64 }
  0xcc   :  { %258 = vsyncpa [#allocation3], 1 }
  0xcd   :  { %260 = vsyncpa [#allocation3 + $0x1], 1 }

</bundles_post_ra>
